<compile_context>
chip_gen: v6e
topology: v6e:2x2x1
jax: 0.10.0
libtpu: 0.0.40
codegen_flags: <defaults>
</compile_context>

<pallas_src>
import math

import jax
import jax.numpy as jnp
from jax import lax
from jax.experimental import pallas as pl
from jax.experimental.pallas import tpu as pltpu


def attention_kernel(x_ref, wqkv_ref, wproj_ref, bproj_ref, o_ref, acc_ref):
    # x_ref:     (1, N, C)     one batch element (resident across the head axis)
    # wqkv_ref:  (1, 3, C, hd) this head's [q|k|v] projection columns (q pre-scaled)
    # wproj_ref: (1, hd, C)    this head's rows of the output projection
    # bproj_ref: (1, C)
    # o_ref:     (1, N, C)     same block for every head -> accumulator output
    # acc_ref:   (N, C) f32 scratch, persists across the head axis
    h = pl.program_id(1)

    x = x_ref[0]                                   # (N, C), native dtype (no f32 upcast)
    w = wqkv_ref[0]                                # (3, C, hd); leading-dim value slices are free

    # Per-head projections (K = C, well-shaped for the MXU depth).
    q = jnp.dot(x, w[0], preferred_element_type=jnp.float32).astype(x.dtype)   # (N, hd)
    k = jnp.dot(x, w[1], preferred_element_type=jnp.float32).astype(x.dtype)   # (N, hd)
    v = jnp.dot(x, w[2], preferred_element_type=jnp.float32).astype(x.dtype)   # (N, hd)

    # Scores: contract the hd axis of both operands -> q @ k^T without a
    # materialized transpose.  Scale is already folded into wq.
    s = lax.dot_general(q, k, (((1,), (1,)), ((), ())),
                        preferred_element_type=jnp.float32)          # (N, N) f32

    # Explicit softmax; normalization deferred past p @ v.
    m = jnp.max(s, axis=-1, keepdims=True)                           # (N, 1)
    p = jnp.exp(s - m)                                               # (N, N) f32
    l = jnp.sum(p, axis=-1, keepdims=True)                           # (N, 1)
    # TODO(synk): attn_drop would be applied to p here (identity at p=0.0).
    ctx = jnp.dot(p.astype(v.dtype), v,
                  preferred_element_type=jnp.float32)                # (N, hd) f32
    ctx = ctx * pl.reciprocal(l, approx=True)                        # EUP, not VALU divide

    @pl.when(h == 0)
    def _():
        # Initialize the accumulator with the (hoisted, once per batch) bias.
        acc_ref[...] = jnp.broadcast_to(
            bproj_ref[...].astype(jnp.float32), acc_ref.shape)

    # This head's partial contribution to the output projection.
    acc_ref[...] += jnp.dot(ctx.astype(x.dtype), wproj_ref[0],
                            preferred_element_type=jnp.float32)      # (N, C)

    @pl.when(h == pl.num_programs(1) - 1)
    def _():
        o_ref[0] = acc_ref[...].astype(o_ref.dtype)


def attention_pallas(x, w_qkv, w_proj, b_proj, num_heads):
    """x: (B, N, C); w_qkv: (C, 3C) input-major [q|k|v]; w_proj: (C, C)
    input-major; b_proj: (1, C)."""
    B, N, C = x.shape
    H = num_heads
    assert C % H == 0
    hd = C // H
    scale = hd ** (-0.5)

    # Wrapper-side layout plumbing (one-time): head-major weight layouts with
    # the attention scale folded into the q projection, and q/k/v stacked so
    # each grid step issues a single weight DMA.  Keeping the head axis leading
    # lets the BlockSpec deliver exact per-head slices while the block's
    # last-two dims equal the full array dims (satisfies the (8,128) rule).
    wq = (w_qkv[:, 0 * C:1 * C] * scale).reshape(C, H, hd).transpose(1, 0, 2)  # (H, C, hd)
    wk = w_qkv[:, 1 * C:2 * C].reshape(C, H, hd).transpose(1, 0, 2)            # (H, C, hd)
    wv = w_qkv[:, 2 * C:3 * C].reshape(C, H, hd).transpose(1, 0, 2)            # (H, C, hd)
    wqkv = jnp.stack([wq, wk, wv], axis=1)                                      # (H, 3, C, hd)
    wp = w_proj.reshape(H, hd, C)                                               # (H, hd, C)

    # Advisory cost hint for the XLA scheduler around the custom call.
    itemsize = jnp.dtype(x.dtype).itemsize
    cost = pl.CostEstimate(
        flops=2 * B * H * N * hd * (4 * C + 2 * N),          # qkv + qk^T + pv + proj
        transcendentals=B * H * N * N,                       # exp in softmax
        bytes_accessed=(2 * B * N * C + B * 4 * C * C + C) * itemsize,
    )

    return pl.pallas_call(
        attention_kernel,
        out_shape=jax.ShapeDtypeStruct((B, N, C), x.dtype),
        grid=(B, H),                                   # head (reduction) axis last
        in_specs=[
            pl.BlockSpec((1, N, C), lambda b, h: (b, 0, 0)),        # x: fetched once per b
            pl.BlockSpec((1, 3, C, hd), lambda b, h: (h, 0, 0, 0)), # stacked q|k|v head slice
            pl.BlockSpec((1, hd, C), lambda b, h: (h, 0, 0)),       # proj rows for head
            pl.BlockSpec((1, C), lambda b, h: (0, 0)),              # proj bias
        ],
        out_specs=pl.BlockSpec((1, N, C), lambda b, h: (b, 0, 0)),  # accumulator block
        scratch_shapes=[pltpu.VMEM((N, C), jnp.float32)],
        compiler_params=pltpu.CompilerParams(
            dimension_semantics=("parallel", "arbitrary"),
            # Per-step footprint is small by construction (head-sliced weights);
            # modest explicit budget leaves headroom even on v7x (64 MiB VMEM).
            vmem_limit_bytes=48 * 1024 * 1024,
        ),
        cost_estimate=cost,
    )(x, wqkv, wp, b_proj)


def attention_reference(x, w_qkv, w_proj, b_proj, num_heads):
    """Pure-JAX reference mirroring the PyTorch forward."""
    B, N, C = x.shape
    hd = C // num_heads
    scale = hd ** (-0.5)
    qkv = x @ w_qkv                                            # (B, N, 3C)
    qkv = qkv.reshape(B, N, 3, num_heads, hd).transpose(2, 0, 3, 1, 4)
    q, k, v = qkv[0], qkv[1], qkv[2]                           # (B, H, N, hd)
    attn = (q @ jnp.swapaxes(k, -2, -1)) * scale               # (B, H, N, N)
    attn = jax.nn.softmax(attn, axis=-1)
    out = (attn @ v).transpose(0, 2, 1, 3).reshape(B, N, C)    # (B, N, C)
    return out @ w_proj + b_proj[0]


if __name__ == "__main__":
    # Small shapes consistent with the module: B=2, seq N=8, dim C=32, 8 heads.
    B, N, C = 2, 8, 32
    num_heads = 8

    key = jax.random.PRNGKey(0)
    kx, kqkv, kproj, kb = jax.random.split(key, 4)

    x = jax.random.normal(kx, (B, N, C), dtype=jnp.float32)

    # Deterministic parameter init (uniform, roughly PyTorch Linear scale).
    bound = 1.0 / math.sqrt(C)
    w_qkv = jax.random.uniform(kqkv, (C, 3 * C), jnp.float32, -bound, bound)  # qkv_bias=False
    w_proj = jax.random.uniform(kproj, (C, C), jnp.float32, -bound, bound)
    b_proj = jax.random.uniform(kb, (1, C), jnp.float32, -bound, bound)

    out = attention_pallas(x, w_qkv, w_proj, b_proj, num_heads)
    out = jax.block_until_ready(out)

    ref = attention_reference(x, w_qkv, w_proj, b_proj, num_heads)
    assert out.shape == (B, N, C)
    # approx-reciprocal softmax normalization -> slightly looser tolerance.
    assert jnp.allclose(out, ref, rtol=2e-3, atol=2e-3), "mismatch vs reference"

    print("KERNEL_OK")
</pallas_src>

<mosaic_0001>
module attributes {stable_mosaic.version = 11 : i64} {
  func.func @attention_kernel(%arg0: i32, %arg1: i32, %arg2: memref<1x8x32xf32, #tpu.memory_space<vmem>>, %arg3: memref<1x3x32x4xf32, #tpu.memory_space<vmem>>, %arg4: memref<1x4x32xf32, #tpu.memory_space<vmem>>, %arg5: memref<1x32xf32, #tpu.memory_space<vmem>>, %arg6: memref<1x8x32xf32, #tpu.memory_space<vmem>>, %arg7: memref<8x32xf32, #tpu.memory_space<vmem>>) attributes {dimension_semantics = [#tpu.dimension_semantics<parallel>, #tpu.dimension_semantics<arbitrary>], iteration_bounds = array<i64: 2, 8>, scalar_prefetch = 0 : i64, scratch_operands = 1 : i64, tpu.core_type = #tpu.core_type<tc>, window_params = [{transform_indices = @transform_0, window_bounds = array<i64: 1, 8, 32>}, {transform_indices = @transform_1, window_bounds = array<i64: 1, 3, 32, 4>}, {transform_indices = @transform_2, window_bounds = array<i64: 1, 4, 32>}, {pipeline_mode = #tpu.pipeline_mode<synchronous>, transform_indices = @transform_3, window_bounds = array<i64: 1, 32>}, {transform_indices = @transform_4, window_bounds = array<i64: 1, 8, 32>}]} {
    %c0 = arith.constant 0 : index
    %c0_0 = arith.constant 0 : index
    %c0_1 = arith.constant 0 : index
    %0 = vector.load %arg2[%c0, %c0_0, %c0_1] : memref<1x8x32xf32, #tpu.memory_space<vmem>>, vector<1x8x32xf32>
    %1 = vector.shape_cast %0 : vector<1x8x32xf32> to vector<8x32xf32>
    %c0_2 = arith.constant 0 : index
    %c0_3 = arith.constant 0 : index
    %c0_4 = arith.constant 0 : index
    %c0_5 = arith.constant 0 : index
    %2 = vector.load %arg3[%c0_2, %c0_3, %c0_4, %c0_5] : memref<1x3x32x4xf32, #tpu.memory_space<vmem>>, vector<1x3x32x4xf32>
    %3 = vector.shape_cast %2 : vector<1x3x32x4xf32> to vector<3x32x4xf32>
    %4 = vector.extract_strided_slice %3 {offsets = [0, 0, 0], sizes = [1, 32, 4], strides = [1, 1, 1]} : vector<3x32x4xf32> to vector<1x32x4xf32>
    %5 = vector.shape_cast %4 : vector<1x32x4xf32> to vector<32x4xf32>
    %cst = arith.constant dense<0.000000e+00> : vector<8x4xf32>
    %6 = tpu.matmul %1, %5, %cst {dimension_numbers = #tpu.dot_dimension_numbers<[1], [0], [0], [1], [0, 0, 1, 1], [], []>} : vector<8x32xf32>, vector<32x4xf32>, vector<8x4xf32> -> vector<8x4xf32>
    %7 = vector.extract_strided_slice %3 {offsets = [1, 0, 0], sizes = [1, 32, 4], strides = [1, 1, 1]} : vector<3x32x4xf32> to vector<1x32x4xf32>
    %8 = vector.shape_cast %7 : vector<1x32x4xf32> to vector<32x4xf32>
    %cst_6 = arith.constant dense<0.000000e+00> : vector<8x4xf32>
    %9 = tpu.matmul %1, %8, %cst_6 {dimension_numbers = #tpu.dot_dimension_numbers<[1], [0], [0], [1], [0, 0, 1, 1], [], []>} : vector<8x32xf32>, vector<32x4xf32>, vector<8x4xf32> -> vector<8x4xf32>
    %10 = vector.extract_strided_slice %3 {offsets = [2, 0, 0], sizes = [1, 32, 4], strides = [1, 1, 1]} : vector<3x32x4xf32> to vector<1x32x4xf32>
    %11 = vector.shape_cast %10 : vector<1x32x4xf32> to vector<32x4xf32>
    %cst_7 = arith.constant dense<0.000000e+00> : vector<8x4xf32>
    %12 = tpu.matmul %1, %11, %cst_7 {dimension_numbers = #tpu.dot_dimension_numbers<[1], [0], [0], [1], [0, 0, 1, 1], [], []>} : vector<8x32xf32>, vector<32x4xf32>, vector<8x4xf32> -> vector<8x4xf32>
    %cst_8 = arith.constant dense<0.000000e+00> : vector<8x8xf32>
    %13 = tpu.matmul %6, %9, %cst_8 {dimension_numbers = #tpu.dot_dimension_numbers<[1], [1], [0], [0], [0, 0, 1, 0], [], []>} : vector<8x4xf32>, vector<8x4xf32>, vector<8x8xf32> -> vector<8x8xf32>
    %cst_9 = arith.constant dense<0xFF800000> : vector<8xf32>
    %14 = vector.multi_reduction <maximumf>, %13, %cst_9 [1] : vector<8x8xf32> to vector<8xf32>
    %15 = vector.shape_cast %14 : vector<8xf32> to vector<8x1xf32>
    %16 = vector.broadcast %15 : vector<8x1xf32> to vector<8x8xf32>
    %17 = arith.subf %13, %16 : vector<8x8xf32>
    %18 = math.exp %17 : vector<8x8xf32>
    %cst_10 = arith.constant dense<0.000000e+00> : vector<8xf32>
    %19 = vector.multi_reduction <add>, %18, %cst_10 [1] : vector<8x8xf32> to vector<8xf32>
    %20 = vector.shape_cast %19 : vector<8xf32> to vector<8x1xf32>
    %cst_11 = arith.constant dense<0.000000e+00> : vector<8x4xf32>
    %21 = tpu.matmul %18, %12, %cst_11 {dimension_numbers = #tpu.dot_dimension_numbers<[1], [0], [0], [1], [0, 0, 1, 1], [], []>} : vector<8x8xf32>, vector<8x4xf32>, vector<8x4xf32> -> vector<8x4xf32>
    %22 = tpu.reciprocal %20 {approx = true} : vector<8x1xf32> -> vector<8x1xf32>
    %23 = vector.broadcast %22 : vector<8x1xf32> to vector<8x4xf32>
    %24 = arith.mulf %21, %23 : vector<8x4xf32>
    %c0_i32 = arith.constant 0 : i32
    %25 = arith.cmpi eq, %arg1, %c0_i32 : i32
    %26 = arith.extui %25 : i1 to i32
    %c0_i32_12 = arith.constant 0 : i32
    %27 = arith.cmpi ne, %26, %c0_i32_12 : i32
    scf.if %27 {
      %c0_22 = arith.constant 0 : index
      %c0_23 = arith.constant 0 : index
      %37 = vector.load %arg5[%c0_22, %c0_23] : memref<1x32xf32, #tpu.memory_space<vmem>>, vector<1x32xf32>
      %38 = vector.shape_cast %37 : vector<1x32xf32> to vector<1x32xf32>
      %39 = vector.broadcast %38 : vector<1x32xf32> to vector<8x32xf32>
      %c0_24 = arith.constant 0 : index
      %c0_25 = arith.constant 0 : index
      %40 = vector.load %arg7[%c0_24, %c0_25] : memref<8x32xf32, #tpu.memory_space<vmem>>, vector<8x32xf32>
      tpu.vector_store %arg7[%c0_24, %c0_25], %39 {strides = array<i32>} : memref<8x32xf32, #tpu.memory_space<vmem>>, vector<8x32xf32>,
    } else {
    }
    %c0_13 = arith.constant 0 : index
    %c0_14 = arith.constant 0 : index
    %28 = vector.load %arg7[%c0_13, %c0_14] : memref<8x32xf32, #tpu.memory_space<vmem>>, vector<8x32xf32>
    %c0_15 = arith.constant 0 : index
    %c0_16 = arith.constant 0 : index
    %c0_17 = arith.constant 0 : index
    %29 = vector.load %arg4[%c0_15, %c0_16, %c0_17] : memref<1x4x32xf32, #tpu.memory_space<vmem>>, vector<1x4x32xf32>
    %30 = vector.shape_cast %29 : vector<1x4x32xf32> to vector<4x32xf32>
    %cst_18 = arith.constant dense<0.000000e+00> : vector<8x32xf32>
    %31 = tpu.matmul %24, %30, %cst_18 {dimension_numbers = #tpu.dot_dimension_numbers<[1], [0], [0], [1], [0, 0, 1, 1], [], []>} : vector<8x4xf32>, vector<4x32xf32>, vector<8x32xf32> -> vector<8x32xf32>
    %32 = arith.addf %28, %31 : vector<8x32xf32>
    %c0_19 = arith.constant 0 : index
    %c0_20 = arith.constant 0 : index
    %33 = vector.load %arg7[%c0_19, %c0_20] : memref<8x32xf32, #tpu.memory_space<vmem>>, vector<8x32xf32>
    tpu.vector_store %arg7[%c0_19, %c0_20], %32 {strides = array<i32>} : memref<8x32xf32, #tpu.memory_space<vmem>>, vector<8x32xf32>,
    %c7_i32 = arith.constant 7 : i32
    %34 = arith.cmpi eq, %arg1, %c7_i32 : i32
    %35 = arith.extui %34 : i1 to i32
    %c0_i32_21 = arith.constant 0 : i32
    %36 = arith.cmpi ne, %35, %c0_i32_21 : i32
    scf.if %36 {
      %c0_22 = arith.constant 0 : index
      %c0_23 = arith.constant 0 : index
      %37 = vector.load %arg7[%c0_22, %c0_23] : memref<8x32xf32, #tpu.memory_space<vmem>>, vector<8x32xf32>
      %c0_24 = arith.constant 0 : index
      %c0_25 = arith.constant 0 : index
      %c0_26 = arith.constant 0 : index
      %38 = vector.load %arg6[%c0_24, %c0_25, %c0_26] : memref<1x8x32xf32, #tpu.memory_space<vmem>>, vector<1x8x32xf32>
      %39 = vector.shape_cast %38 : vector<1x8x32xf32> to vector<8x32xf32>
      %40 = vector.shape_cast %37 : vector<8x32xf32> to vector<1x8x32xf32>
      tpu.vector_store %arg6[%c0_24, %c0_25, %c0_26], %40 {strides = array<i32>} : memref<1x8x32xf32, #tpu.memory_space<vmem>>, vector<1x8x32xf32>,
    } else {
    }
    return
  }
  func.func @transform_0(%arg0: i32, %arg1: i32) -> (i32, i32, i32) {
    %c0_i32 = arith.constant 0 : i32
    %c0_i32_0 = arith.constant 0 : i32
    %c0_i32_1 = arith.constant 0 : i32
    return %arg0, %c0_i32, %c0_i32_0 : i32, i32, i32
  }
  func.func @transform_1(%arg0: i32, %arg1: i32) -> (i32, i32, i32, i32) {
    %c0_i32 = arith.constant 0 : i32
    %c0_i32_0 = arith.constant 0 : i32
    %c0_i32_1 = arith.constant 0 : i32
    %c0_i32_2 = arith.constant 0 : i32
    return %arg1, %c0_i32, %c0_i32_0, %c0_i32_1 : i32, i32, i32, i32
  }
  func.func @transform_2(%arg0: i32, %arg1: i32) -> (i32, i32, i32) {
    %c0_i32 = arith.constant 0 : i32
    %c0_i32_0 = arith.constant 0 : i32
    %c0_i32_1 = arith.constant 0 : i32
    return %arg1, %c0_i32, %c0_i32_0 : i32, i32, i32
  }
  func.func @transform_3(%arg0: i32, %arg1: i32) -> (i32, i32) {
    %c0_i32 = arith.constant 0 : i32
    %c0_i32_0 = arith.constant 0 : i32
    %c0_i32_1 = arith.constant 0 : i32
    return %c0_i32, %c0_i32_0 : i32, i32
  }
  func.func @transform_4(%arg0: i32, %arg1: i32) -> (i32, i32, i32) {
    %c0_i32 = arith.constant 0 : i32
    %c0_i32_0 = arith.constant 0 : i32
    %c0_i32_1 = arith.constant 0 : i32
    return %arg0, %c0_i32, %c0_i32_0 : i32, i32, i32
  }
}

</mosaic_0001>

<bundles_post_ra>
// kernel: tpu_custom_call.1
= control target key start
LH: loop header
LB: loop body
LE: loop exit
PB: predicated region body
PF: predicated region fallthrough
CT: control target
= control target key end

     0   :  { %9 = vsyncpa [#allocation4], 0  ;;  %s1323_s0 = inlined_call_operand.vmem [shape: f32[2,8,32], index: 0, kind: input, shape index: {}]   ;;  %s1324_s1 = inlined_call_operand.vmem [shape: f32[8,3,32,4], index: 1, kind: input, shape index: {}]   ;;  %s1325_s2 = inlined_call_operand.vmem [shape: f32[8,4,32], index: 2, kind: input, shape index: {}]   ;;  %s1326_s3 = inlined_call_operand.vmem [shape: f32[1,32], index: 3, kind: input, shape index: {}]   ;;  %s1327_s4 = inlined_call_operand.hbm [shape: f32[2,8,32], index: 4, kind: output, shape index: {}]  }
   0x1   :  { %11 = vsyncpa [#allocation4 + $0x1], 0  ;;  %s1131_s15 = smov 0   ;;  %s1133_s16 = smov 0  }
   0x2   :  { %s1135_s17 = smov 0   ;;  %s1137_s18 = smov 0  }
   0x3   :  { %s1139_s19 = smov 0   ;;  %s1141_s20 = smov 0  }
   0x4   :  { %s1143_s21 = smov 0   ;;  %s1145_s22 = smov 0  }
   0x5 LB: > { %s838_s23 = sadd.s32 4294967295, %s1101_s22   ;;  %s839_s24 = sadd.s32 4294967294, %s1101_s22   ;;  %s1101_s22 = sphi %s1145_s22, %s17_s22   ;;  %s1097_s21 = sphi %s1143_s21, %s1336_s21   ;;  %s1093_s20 = sphi %s1141_s20, %s1335_s20   ;;  %s1089_s19 = sphi %s1139_s19, %s1334_s19   ;;  %s1085_s18 = sphi %s1137_s18, %s1333_s18   ;;  %s1081_s17 = sphi %s1135_s17, %s1332_s17   ;;  %s1077_s16 = sphi %s1133_s16, %s1331_s16   ;;  %s1073_s15 = sphi %s1131_s15, %s1330_s15  }
   0x6   : > { %s26_s25 = sadd.s32 1, %s1093_s20  ;;  %s29_s26 = sadd.s32 1, %s1097_s21 }
   0x7   : > { %p27_p0 = scmp.ge.s32.totalorder %s26_s25, 8  ;;  %p145_p1 = scmp.ne.s32.totalorder %s1081_s17, %s1077_s16 }
   0x8   : > { %p146_p2 = scmp.eq.s32.totalorder %s838_s23, 15  ;;  %p151_p4 = scmp.ne.s32.totalorder %s1077_s16, %s1073_s15 }
   0x9   : > { %s1338_s25 = smov (%p27_p0, %s26_s25), 0  ;;  %s1340_s26 = smov (!%p27_p0, %s29_s26), %s1097_s21 }
   0xa   : > { %p1180_p3 = por %p146_p2, %p145_p1  ;;  %p31_p5 = scmp.ge.s32.totalorder %s1340_s26, 2 }
   0xb   : > { %p152_p6 = scmp.eq.s32.totalorder %s839_s24, 15  ;;  %p842_p7 = scmp.ge.s32.totalorder %s1101_s22, 1 }
   0xc   : > { %p195_p8 = scmp.lt.s32.totalorder %s1101_s22, 17  ;;  %s1342_s26 = smov (%p31_p5, %s1340_s26), 0 }
   0xd   : > { %p1190_p9 = por %p152_p6, %p151_p4  ;;  %s132_s29 = ssub.s32 %s1097_s21, %s1342_s26 }
   0xe   : > { %p196_p10 = pnand %p842_p7, %p195_p8  ;;  %s135_s30 = sadd.s32 1, %s1081_s17 }
   0xf   : > { %p133_p11 = scmp.eq.s32.totalorder %s132_s29, 0  ;;  %p233_p12 = scmp.lt.s32.totalorder (!%p196_p10), %s1085_s18, 7 }
  0x10   : > { %199 = sbr.rel (%p196_p10) target bundleno = 1006 (0x3ee), region = 36  ;;  %s226_s6 = sand.u32 (!%p196_p10), 1, %s1077_s16  }
  0x11   : > { %s1198_s5 = scalar_select %p133_p11, %s1081_s17, %s135_s30  }
  0x12   : > { %s1205_s7 = sshll.u32 (!%p196_p10), %s226_s6, 3  ;;  %p229_p13 = scmp.lt.s32.totalorder (!%p196_p10), %s1089_s19, 1 }
  0x13   : > { %s228_s11 = scalar_lea.vmem (!%p196_p10), [#allocation3], %s1205_s7  ;;  %p853_p0 = scmp.ne.s32.totalorder (!%p196_p10), %s1085_s18, 0 }
  0x15   : > { %v1103_v0 = vmov 0.0   ;;  %s234_s8 = scalar_select %p233_p12, %s1085_s18, 7  ;;  %vm1104_vm0 = vmmov 0   ;;  %vm255_vm1 = vcmask 261120   ;;  %vm469_vm2 = vcmask 31744  }
  0x16   : > { %894 = vmatprep.subr.mxu1 %v1103_v0  ;;  %883 = vmatprep.subr.mxu0 %v1103_v0  ;;  %s230_s29 = scalar_select %p229_p13, %s1089_s19, 1  ;;  %vm546_vm3 = vcmask 64512  }
  0x17   : > { %902 = vmatprep.mubr.msk.f32.mxu1 %vm1104_vm0, %v1103_v0  ;;  %891 = vmatprep.mubr.msk.f32.mxu0 %vm1104_vm0, %v1103_v0  ;;  %s931_s9 = smul.u32 96, %s234_s8  ;;  %s846_s10 = sshll.u32 %s234_s8, 2 }
  0x18   : > { %s1217_s13 = scalar_lea.vmem %s1325_s2, %s846_s10  ;;  %s844_s30 = sshll.u32 %s230_s29, 3 }
  0x19   : > { %s1222_s24 = scalar_lea.vmem %s1324_s1, %s931_s9  ;;  %s232_s10 = scalar_lea.vmem %s1323_s0, %s844_s30 }
  0x1a   : > { %v250_v1 = vld [vmem:[%s1222_s24 + $0x38] sm:$0xff]  ;;  %v249_v3 = vld [vmem:[%s1222_s24 + $0x30] sm:$0xff]  ;;  %v248_v5 = vld [vmem:[%s1222_s24 + $0x28] sm:$0xff] }
  0x1b   : > { %v246_v2 = vld [vmem:[%s1222_s24 + $0x18] sm:$0xff]  ;;  %895 = vmatpush3.msra.mxu1 %v250_v1  ;;  %v245_v4 = vld [vmem:[%s1222_s24 + $0x10] sm:$0xff]  ;;  %v244_v6 = vld [vmem:[%s1222_s24 + $0x8] sm:$0xff] }
  0x1c   : > { %884 = vmatpush3.msra.mxu0 %v246_v2  ;;  %896 = vmatprep.subr.mxu1 %v1103_v0  ;;  %v247_v7 = vld [vmem:[%s1222_s24 + $0x20] sm:$0xff]  ;;  %v254_v10 = vld [vmem:[%s1222_s24 + $0x58] sm:$0xff]  ;;  %v253_v11 = vld [vmem:[%s1222_s24 + $0x50] sm:$0xff] }
  0x1d   : > { %885 = vmatprep.subr.mxu0 %v1103_v0  ;;  %897 = vmatpush3.msra.mxu1 %v249_v3  ;;  %v243_v8 = vld [vmem:[%s1222_s24] sm:$0xff]  ;;  %v252_v12 = vld [vmem:[%s1222_s24 + $0x48] sm:$0xff] }
  0x1e   : > { %886 = vmatpush3.msra.mxu0 %v245_v4  ;;  %898 = vmatprep.subr.mxu1 %v1103_v0  ;;  %v242_v9 = vld [vmem:[%s232_s10] sm:$0xff] }
  0x1f   : > { %887 = vmatprep.subr.mxu0 %v1103_v0  ;;  %899 = vmatpush3.msra.mxu1 %v248_v5  ;;  %v251_v13 = vld [vmem:[%s1222_s24 + $0x40] sm:$0xff] }
  0x20   : > { %888 = vmatpush3.msra.mxu0 %v244_v6  ;;  %900 = vmatprep.subr.mxu1 %v1103_v0 }
  0x21   : > { %889 = vmatprep.subr.mxu0 %v1103_v0  ;;  %901 = vmatpush3.msra.mxu1 %v247_v7 }
  0x22   : > { %890 = vmatpush3.msra.mxu0 %v243_v8  ;;  %903 = vmatmul.mubr.msk.f32.vlgmr.msra.gmra.mxu1 %vm255_vm1, %v242_v9 }
  0x23   : > { %892 = vmatmul.mubr.msk.f32.vlgmr.msra.gmra.mxu0 %vm255_vm1, %v242_v9  ;;  %916 = vmatprep.subr.mxu1 %v1103_v0 }
  0x24   : > { %918 = vmatprep.mubr.msk.f32.mxu1 %vm1104_vm0, %v1103_v0  ;;  %905 = vmatprep.subr.mxu0 %v1103_v0 }
  0x25   : > { %913 = vmatprep.mubr.msk.f32.mxu0 %vm1104_vm0, %v1103_v0  ;;  %906 = vmatpush3.msra.mxu0 %v254_v10 }
  0x26   : > { %907 = vmatprep.subr.mxu0 %v1103_v0 }
  0x27   : > { %908 = vmatpush3.msra.mxu0 %v253_v11 }
  0x28   : > { %909 = vmatprep.subr.mxu0 %v1103_v0 }
  0x29   : > { %910 = vmatpush3.msra.mxu0 %v252_v12 }
  0x2a   : > { %911 = vmatprep.subr.mxu0 %v1103_v0 }
  0x2b   : > { %912 = vmatpush3.msra.mxu0 %v251_v13 }
  0x2c   : > { %914 = vmatmul.mubr.msk.f32.vlgmr.msra.gmra.mxu0 %vm255_vm1, %v242_v9 }
  0xe2   : > { %v395_v14 = vpop.f32.mrf.mxu1 }
  0xe3   : > { %v325_v15 = vpop.f32.mrf.mxu0  ;;  %917 = vmatpush3.xpose.msk.msra.mxu1 %vm469_vm2, %v395_v14 }
  0xe4   : > { %v904_v16 = vpop.f32.mrf.mxu1  ;;  %921 = vmatprep.subr.mxu1 %v1103_v0 }
  0xe5   : > { %v893_v17 = vpop.f32.mrf.mxu0 }
  0xe6   : > { %919 = vmatmul.mubr.msk.f32.vlgmr.msra.gmra.mxu1 %vm469_vm2, %v325_v15 }
  0xe7   : > { %923 = vmatprep.mubr.msk.f32.mxu1 %vm1104_vm0, %v1103_v0 }
  0xec   : > { %v465_v21 = vpop.f32.mrf.mxu0 }
  0xed   : > { %922 = vmatpush3.msra.mxu1 %v465_v21 }
  0xee   : > { %v915_v22 = vpop.f32.mrf.mxu0 }
 0x1a6   : > { %v542_v18 = vpop.f32.mrf.mxu1 }
 0x1a7   : > { %v547_v19 = vsel %vm546_vm3, %v542_v18, -inf }
 0x1a8   : > { %548 = vmax.xlane.f32.xlu0 %v547_v19  ;;  %v920_v20 = vpop.f32.mrf.mxu1 }
 0x231   : > { %v549_v23 = vpop.xlane.xlu0 %548 }
 0x232   : > { %v550_v24 = vsub.f32 %v542_v18, %v549_v23 }
 0x234   : > { %v551_v25 = vmul.f32 1.442695, %v550_v24 }
 0x236   : > { %1005 = vpow2.f32 %v551_v25 }
 0x243   : > { %v1006_v26 = vpop.eup %1005 }
 0x244   : > { %924 = vmatmul.mubr.msk.f32.vlgmr.msra.gmra.mxu1 %vm546_vm3, %v1006_v26  ;;  %v553_v27 = vsel %vm546_vm3, %v1006_v26, 0.0 }
 0x245   : > { %554 = vadd.xlane.f32.xlu0 %v553_v27 }
 0x2ce   : > { %v555_v28 = vpop.xlane.xlu0 %554 }
 0x2cf   : > { %1007 = vrcp.f32 %v555_v28 }
 0x2dc   : > { %v1008_v29 = vpop.eup %1007 }
 0x302   : > { %634 = sbr.rel (%p853_p0) target bundleno = 777 (0x309), region = 40 }
 0x304   : > { %v625_v30 = vpop.f32.mrf.mxu1 }
 0x305   : > { %v630_v31 = vmul.f32 %v1008_v29, %v625_v30 }
 0x306   : > { %v925_v32 = vpop.f32.mrf.mxu1 }
 0x307   : > { %v854_v33 = vld [vmem:[%s1326_s3] ss:$0 sm:$0xff] }
 0x308   : > { %642 = vst.msk [vmem:[#allocation2] sm:$0xff] %vm255_vm1, %v854_v33 }
 0x309 PF: > { %926 = vmatprep.subr.mxu0 %v1103_v0  ;;  %v644_v34 = vld [vmem:[%s1217_s13] sm:$0xf]  ;;  %vm648_vm4 = vcmask 1043456   ;;  %928 = vmatprep.mubr.msk.f32.mxu0 %vm1104_vm0, %v1103_v0  ;;  %p857_p1 = scmp.ne.s32.totalorder %s1085_s18, 7 }
 0x30a   : > { %927 = vmatpush3.msk.msra.mxu0 %vm648_vm4, %v644_v34 }
 0x30b   : > { %929 = vmatmul.mubr.msk.f32.vlgmr.msra.gmra.mxu0 %vm469_vm2, %v630_v31 }
 0x30f   : > { %v643_v35 = vld [vmem:[#allocation2] sm:$0xff] }
 0x3ca   : > { %727 = sbr.rel (%p857_p1) target bundleno = 983 (0x3d7), region = 44 }
 0x3cb   : > { %v718_v36 = vpop.f32.mrf.mxu0 }
 0x3cc   : > { %v722_v37 = vadd.f32 %v718_v36, %v643_v35 }
 0x3cd   : > { %v930_v38 = vpop.f32.mrf.mxu0 }
 0x3ce   : > { %723 = vst.msk [vmem:[#allocation2] sm:$0xff] %vm255_vm1, %v722_v37 }
 0x3d5   : > { %v728_v39 = vld [vmem:[#allocation2] sm:$0xff] }
 0x3d6   : > { %729 = vst.msk [vmem:[%s228_s11] sm:$0xff] %vm255_vm1, %v728_v39 }
 0x3d7 PF: > { %s859_s7 = sshll.u32 %s1089_s19, 7  ;;  %s744_s29 = sshll.u32 %s228_s11, 4  ;;  %s745_s29 = int_to_ptr.vmem [resolvable:$true] %s744_s29 }
 0x3d8   : > { %s742_s24 = scalar_lea.hbm %s1327_s4, %s859_s7  ;;  %s731_s30 = scalar_lea.sflag [#allocation4], %s226_s6 }
 0x3d9   : > { %s1009_s8 = scalar_lea.vmem %s745_s29, 128  ;;  %s1105_s18 = smov [#allocation3]  }
 0x3da   : > { %p1010_p2 = scmp.ne.s32.totalorder %s745_s29, %s1009_s8  ;;  %s1013_s9 = sshll.u32 %s1105_s18, 4  ;;  %s1014_s9 = int_to_ptr.vmem [resolvable:$false] %s1013_s9 }
 0x3db   : > { %s1015_s10 = scalar_lea.vmem %s1014_s9, 256  ;;  %p1016_p6 = scmp.lt.s32.totalorder %s745_s29, %s1014_s9 }
 0x3dc   : > { %p1011_p4 = pnand %p1010_p2, %p1180_p3  ;;  %p1017_p7 = scmp.lt.s32.totalorder %s1015_s10, %s1009_s8 }
 0x3de   : > { %p1012_p5 = pneg %p1011_p4  ;;  %p1018_p8 = por %p1017_p7, %p1016_p6 }
 0x3e0   : > { %p1019_p10 = pnand %p1018_p8, %p1012_p5 }
 0x3e2   : > { %1022 = shalt.err (!%p1019_p10)
}
 0x3e3   : > { %s1023_s19 = scalar_lea.hbm %s742_s24, 128  ;;  %s1027_s12 = scalar_lea.hbm %s1327_s4, 256 }
 0x3e4   : > { %p1024_p11 = scmp.ne.s32.totalorder %s742_s24, %s1023_s19  ;;  %p1028_p0 = scmp.lt.s32.totalorder %s742_s24, %s1327_s4 }
 0x3e5   : > { %p1029_p1 = scmp.lt.s32.totalorder %s1027_s12, %s1023_s19 }
 0x3e6   : > { %p1025_p12 = pnand %p1024_p11, %p1180_p3 }
 0x3e7   : > { %p1030_p2 = por %p1029_p1, %p1028_p0 }
 0x3e8   : > { %p1026_p13 = pneg %p1025_p12 }
 0x3ea   : > { %p1031_p4 = pnand %p1030_p2, %p1026_p13 }
 0x3ec   : > { %1034 = shalt.err (!%p1031_p4)
}
 0x3ed   : > { %932 = dma.vmem_to_hbm [thread:$0]  (%p1180_p3), %s745_s29, 128, %s742_s24, %s731_s30  }
 0x3ee PF: > { %p938_p5 = scmp.ge.s32.totalorder %s1101_s22, 2  ;;  %s756_s13 = sand.u32 1, %s1073_s15  }
 0x3ef   : > { %s757_s23 = scalar_lea.sflag [#allocation4], %s756_s13 }
 0x3f0   : > { %p935_p6 = pnand %p938_p5, %p1190_p9 }
 0x3f2   : > { %p936_p7 = pneg %p935_p6 }
 0x3f4   : > { %1068 = dma.done.wait (%p936_p7), %s757_s23, 128  }
 0x3f5   : > { %1070 = vsyncadd (%p936_p7), %s757_s23, 4294967168  ;;  %s17_s22 = sadd.s32 1, %s1101_s22   ;;  %s1330_s15 = smov %s1077_s16 }
 0x3f6   : > { %p14_p8 = scmp.ge.s32.totalorder %s17_s22, 18   ;;  %s1331_s16 = smov %s1081_s17 }
 0x3f7   : > { %s1332_s17 = smov %s1198_s5  ;;  %s1333_s18 = smov %s1093_s20 }
 0x3f8   : > { %s1334_s19 = smov %s1097_s21  ;;  %s1335_s20 = smov %s1338_s25 }
 0x3f9   : > { %s1336_s21 = smov %s1342_s26  ;;  %16 = sbr.rel (!%p14_p8) target bundleno = 5 (0x5), region = 85 }
 0x3fe   :  { %762 = vsyncpa [#allocation4], 1 }
 0x3ff   :  { %764 = vsyncpa [#allocation4 + $0x1], 1 }

</bundles_post_ra>
